<compile_context>
chip_gen: v5e
topology: v5e:2x2
jax: 0.10.0
libtpu: 0.0.40
codegen_flags: <defaults>
</compile_context>

<pallas_src>
import functools

import jax
import jax.numpy as jnp
from jax.experimental import pallas as pl
from jax.experimental.pallas import tpu as pltpu


# ---------------------------------------------------------------------------
# Generation-dependent sizing (v5e/v6e: 128 MiB VMEM, v7x: 64 MiB).
# ---------------------------------------------------------------------------
def _vmem_capacity():
    cap = 128 * 1024 * 1024
    try:
        info = pltpu.get_tpu_info()
        cap = getattr(info, "vmem_capacity_bytes", cap) or cap
    except Exception:
        pass
    return int(cap)


_VMEM_CAP = _vmem_capacity()
_VMEM_LIMIT = int(min(100 * 1024 * 1024, _VMEM_CAP * 3 // 4))
# Bigger tiles on 128 MiB parts (fewer grid steps, closer to HBM roofline),
# smaller on v7x where the resident conv image + pad scratch eat VMEM.
_TILE_TARGET = (3 << 20) if _VMEM_CAP > (64 << 20) else (3 << 19)


def _pick_rows(extent, bytes_per_row, target=None):
    """Largest divisor of `extent` whose tile stays under `target` bytes."""
    target = _TILE_TARGET if target is None else target
    t = max(1, min(extent, target // max(1, bytes_per_row)))
    while extent % t != 0:
        t -= 1
    return t


# ---------------------------------------------------------------------------
# (x - mean) * (1/std) per-channel ImageNet normalization, lane-dense view.
# ---------------------------------------------------------------------------
def _normalize_kernel(x_ref, m_ref, s_ref, o_ref):
    o_ref[...] = ((x_ref[...] - m_ref[...]) * s_ref[...]).astype(o_ref.dtype)


def normalize(x, mean, inv_std, out_dtype):
    # x: (NB, H, W, 3) f32 ; mean/inv_std broadcastable to (3,).
    NB, H, W, C = x.shape
    x2 = x.reshape(NB, H, W * C)                       # free metadata reshape
    m_row = jnp.tile(mean.reshape(-1), W).reshape(1, 1, W * C)
    s_row = jnp.tile(inv_std.reshape(-1), W).reshape(1, 1, W * C)
    TR = _pick_rows(H, W * C * 8)
    row_spec = pl.BlockSpec((1, TR, W * C), lambda n, r: (n, r, 0))
    vec_spec = pl.BlockSpec((1, 1, W * C), lambda n, r: (0, 0, 0))
    out = pl.pallas_call(
        _normalize_kernel,
        out_shape=jax.ShapeDtypeStruct((NB, H, W * C), out_dtype),
        grid=(NB, H // TR),
        in_specs=[row_spec, vec_spec, vec_spec],
        out_specs=row_spec,
        compiler_params=pltpu.CompilerParams(
            dimension_semantics=("parallel", "parallel"),
            vmem_limit_bytes=_VMEM_LIMIT),
    )(x2, m_row, s_row)
    return out.reshape(NB, H, W, C)


# ---------------------------------------------------------------------------
# 3x3 conv (stride 1, pad 1) + bias + ReLU — MXU path with stacked-K weights.
# ---------------------------------------------------------------------------
def _conv_kernel(x_ref, w_ref, b_ref, o_ref, pad_ref,
                 *, row_tile, width, cin, relu):
    # x_ref  : (1, H, W, Cin)     bf16  unpadded image, resident per n
    # w_ref  : (3, 3*Cin, Cout)   bf16  stacked-K weights, one row per dy
    # b_ref  : (1, Cout)          f32
    # o_ref  : (1, TH, W, Cout)   bf16  output row tile
    # pad_ref: (H+2, W+16, Cin)   bf16  zero-bordered copy, built at r == 0
    r = pl.program_id(1)
    height = x_ref.shape[1]
    wp = width + 16                 # image lives at columns [8, 8 + width)
    cout = w_ref.shape[-1]

    @pl.when(r == 0)
    def _build_padded():
        zrow = jnp.zeros((1, wp, cin), pad_ref.dtype)
        pad_ref[0:1, :, :] = zrow
        pad_ref[height + 1:height + 2, :, :] = zrow
        pad_ref[:, 0:8, :] = jnp.zeros((height + 2, 8, cin), pad_ref.dtype)
        rb0 = ((width + 8) // 8) * 8          # aligned start covering col W+8
        pad_ref[:, rb0:wp, :] = jnp.zeros((height + 2, wp - rb0, cin),
                                          pad_ref.dtype)
        pad_ref[1:height + 1, 8:8 + width, :] = x_ref[0]

    row0 = r * row_tile
    # dx-shifted strips built once per tile, reused across dy (hoisted).
    parts = [pad_ref[pl.ds(row0, row_tile + 2), pl.ds(7 + dx, width), :]
             for dx in range(3)]
    big = jnp.concatenate(parts, axis=-1)              # (TH+2, W, 3*Cin)

    acc = None
    for dy in range(3):                                # 3 matmuls, K = 3*Cin
        p = big[dy:dy + row_tile].reshape(row_tile * width, 3 * cin)
        t = jnp.dot(p, w_ref[dy], preferred_element_type=jnp.float32)
        acc = t if acc is None else acc + t
    acc = acc + b_ref[...]
    if relu:
        acc = jnp.maximum(acc, 0.0)
    o_ref[0] = acc.reshape(row_tile, width, cout).astype(o_ref.dtype)


def conv3x3_relu(x, w, b, relu=True):
    # x: (NB, H, W, Cin) bf16 ; w: (3, 3*Cin, Cout) bf16 ; b: (1, Cout) f32
    NB, H, W, Cin = x.shape
    Cout = w.shape[-1]
    # f32 accumulator + bf16 strip + double-buffered bf16 output per row.
    bytes_per_row = W * (Cout * 4 + 3 * Cin * 2 + Cout * 4)
    TH = _pick_rows(H, bytes_per_row)
    kernel = functools.partial(_conv_kernel, row_tile=TH, width=W, cin=Cin,
                               relu=relu)
    return pl.pallas_call(
        kernel,
        out_shape=jax.ShapeDtypeStruct((NB, H, W, Cout), jnp.bfloat16),
        grid=(NB, H // TH),
        in_specs=[
            pl.BlockSpec((1, H, W, Cin), lambda n, r: (n, 0, 0, 0)),
            pl.BlockSpec((3, 3 * Cin, Cout), lambda n, r: (0, 0, 0)),
            pl.BlockSpec((1, Cout), lambda n, r: (0, 0)),
        ],
        out_specs=pl.BlockSpec((1, TH, W, Cout), lambda n, r: (n, r, 0, 0)),
        scratch_shapes=[pltpu.VMEM((H + 2, W + 16, Cin), jnp.bfloat16)],
        compiler_params=pltpu.CompilerParams(
            # Row axis "arbitrary": the r == 0 step builds the padded copy
            # reused by the later row tiles of the same image.
            dimension_semantics=("parallel", "arbitrary"),
            vmem_limit_bytes=_VMEM_LIMIT),
    )(x, w, b)


# ---------------------------------------------------------------------------
# 2x2 max pool, stride 2 — reads the feature map once.
# ---------------------------------------------------------------------------
def _maxpool_kernel(x_ref, o_ref, *, c):
    blk = x_ref[0]                                     # (2*TH, Wo, 2C)
    th2, wo, c2 = blk.shape
    blk = blk.reshape(th2 // 2, 2, wo, c2)             # split major dim (free)
    hmax = jnp.maximum(blk[:, 0], blk[:, 1])           # vertical pair max
    o_ref[0] = jnp.maximum(hmax[..., :c], hmax[..., c:])  # horizontal pair max


def maxpool2x2(x):
    # TODO(synk): fuse into the preceding conv epilogue to save one HBM read
    # of the feature map (kept separate: the unpooled map still feeds the L1).
    NB, H, W, C = x.shape
    Ho, Wo = H // 2, W // 2
    xr = x.reshape(NB, H, Wo, 2 * C)        # free: row-major contiguous merge
    TH = _pick_rows(Ho, 2 * W * C * 2 + Wo * C * 2)
    kernel = functools.partial(_maxpool_kernel, c=C)
    return pl.pallas_call(
        kernel,
        out_shape=jax.ShapeDtypeStruct((NB, Ho, Wo, C), x.dtype),
        grid=(NB, Ho // TH),
        in_specs=[pl.BlockSpec((1, 2 * TH, Wo, 2 * C),
                               lambda n, r: (n, r, 0, 0))],
        out_specs=pl.BlockSpec((1, TH, Wo, C), lambda n, r: (n, r, 0, 0)),
        compiler_params=pltpu.CompilerParams(
            dimension_semantics=("parallel", "parallel"),
            vmem_limit_bytes=_VMEM_LIMIT),
    )(xr)


# ---------------------------------------------------------------------------
# L1 loss (mean) between the two halves of the concatenated feature tensor.
# Lane-dense (NB, H, W*C) view, partial sums into a resident f32 scalar.
# ---------------------------------------------------------------------------
def _l1_sum_kernel(x_ref, y_ref, o_ref):
    @pl.when((pl.program_id(0) == 0) & (pl.program_id(1) == 0))
    def _():
        o_ref[...] = jnp.zeros_like(o_ref)

    d = jnp.abs(x_ref[...].astype(jnp.float32) - y_ref[...].astype(jnp.float32))
    o_ref[0, 0] += jnp.sum(d)


def l1_mean_split(z, n_pairs):
    # z: (2*n_pairs, H, W, C) bf16; compares z[:n_pairs] against z[n_pairs:].
    _, H, W, C = z.shape
    z2 = z.reshape(z.shape[0], H, W * C)               # lane-dense, free
    TH = _pick_rows(H, W * C * 8)
    blk = (1, TH, W * C)
    total = pl.pallas_call(
        _l1_sum_kernel,
        out_shape=jax.ShapeDtypeStruct((1, 1), jnp.float32),
        grid=(n_pairs, H // TH),
        in_specs=[
            pl.BlockSpec(blk, lambda n, r: (n, r, 0)),
            pl.BlockSpec(blk, lambda n, r: (n + n_pairs, r, 0)),
        ],
        out_specs=pl.BlockSpec((1, 1), lambda n, r: (0, 0)),
        compiler_params=pltpu.CompilerParams(
            dimension_semantics=("arbitrary", "arbitrary"),
            vmem_limit_bytes=_VMEM_LIMIT),
    )(z2, z2)
    return total[0, 0] / jnp.float32(n_pairs * H * W * C)


# ---------------------------------------------------------------------------
# Synthetic VGG16 "features" parameters (deterministic init, bf16 weights,
# stacked-K layout (3, 3*Cin, Cout)).  Blocks of vgg16.features[:4], [4:9],
# [9:16], [16:23].
# ---------------------------------------------------------------------------
_VGG_CFG = [
    [(3, 64), (64, 64)],
    [(64, 128), (128, 128)],
    [(128, 256), (256, 256), (256, 256)],
    [(256, 512), (512, 512), (512, 512)],
]


def init_vgg_params(key):
    params = []
    for block_cfg in _VGG_CFG:
        block = []
        for cin, cout in block_cfg:
            key, kw, kb = jax.random.split(key, 3)
            w = jax.random.normal(kw, (3, 3, cin, cout), jnp.float32)
            w = w * jnp.sqrt(2.0 / (9.0 * cin))
            b = jax.random.normal(kb, (1, cout), jnp.float32) * 0.01
            # stacked-K layout: index (dy, dx*Cin + cin, cout)
            block.append((w.reshape(3, 3 * cin, cout).astype(jnp.bfloat16), b))
        params.append(block)
    return params


# ---------------------------------------------------------------------------
# Full forward pass (mirrors VGGPerceptualLoss.forward).
# ---------------------------------------------------------------------------
def vgg_perceptual_loss(inp, tgt, params, mean, inv_std, resize=True):
    # inp/tgt: NCHW float32 (PyTorch convention), channels 1 or 3.
    if inp.shape[1] != 3:
        inp = jnp.tile(inp, (1, 3, 1, 1))              # torch .repeat(1,3,1,1)
        tgt = jnp.tile(tgt, (1, 3, 1, 1))
    N = inp.shape[0]
    # Run input & target through the shared-weight stack in one batch of 2N.
    z = jnp.concatenate([inp, tgt], axis=0)            # (2N, 3, H, W)
    z = jnp.transpose(z, (0, 2, 3, 1))                 # NHWC
    if resize:
        z = normalize(z, mean, inv_std, jnp.float32)   # keep f32 through resize
        # TODO(synk): bilinear resize (gather + lerp) kept in plain JAX;
        # antialias=False matches torch F.interpolate(align_corners=False).
        z = jax.image.resize(z, (2 * N, 224, 224, 3), method="bilinear",
                             antialias=False)
        z = z.astype(jnp.bfloat16)
    else:
        z = normalize(z, mean, inv_std, jnp.bfloat16)
    loss = jnp.float32(0.0)
    for bi, block in enumerate(params):
        if bi > 0:
            z = maxpool2x2(z)
        for w, b in block:
            z = conv3x3_relu(z, w, b, relu=True)
        loss = loss + l1_mean_split(z, N)
    return loss


if __name__ == "__main__":
    key = jax.random.PRNGKey(0)
    kx, ky, kp = jax.random.split(key, 3)

    # Small, module-consistent shapes: single-channel frames get repeated to 3.
    N, C, H, W = 2, 1, 64, 64
    x = jax.random.uniform(kx, (N, C, H, W), jnp.float32)
    y = jax.random.uniform(ky, (N, C, H, W), jnp.float32)

    params = init_vgg_params(kp)
    mean = jnp.array([0.485, 0.456, 0.406], jnp.float32).reshape(1, 1, 1, 3)
    std = jnp.array([0.229, 0.224, 0.225], jnp.float32).reshape(1, 1, 1, 3)
    inv_std = 1.0 / std

    # resize=False keeps the demo small; the resize=True (224x224) path uses
    # the same kernels with larger row tiles.
    loss = vgg_perceptual_loss(x, y, params, mean, inv_std, resize=False)
    jax.block_until_ready(loss)
    assert jnp.isfinite(loss)
    print("KERNEL_OK")
</pallas_src>

<mosaic_0001>
module attributes {stable_mosaic.version = 11 : i64} {
  func.func @_normalize_kernel(%arg0: i32, %arg1: i32, %arg2: memref<1x64x192xf32, #tpu.memory_space<vmem>>, %arg3: memref<1x1x192xf32, #tpu.memory_space<vmem>>, %arg4: memref<1x1x192xf32, #tpu.memory_space<vmem>>, %arg5: memref<1x64x192xbf16, #tpu.memory_space<vmem>>) attributes {dimension_semantics = [#tpu.dimension_semantics<parallel>, #tpu.dimension_semantics<parallel>], iteration_bounds = array<i64: 4, 1>, scalar_prefetch = 0 : i64, scratch_operands = 0 : i64, tpu.core_type = #tpu.core_type<tc>, window_params = [{transform_indices = @transform_0, window_bounds = array<i64: 1, 64, 192>}, {pipeline_mode = #tpu.pipeline_mode<synchronous>, transform_indices = @transform_1, window_bounds = array<i64: 1, 1, 192>}, {pipeline_mode = #tpu.pipeline_mode<synchronous>, transform_indices = @transform_2, window_bounds = array<i64: 1, 1, 192>}, {transform_indices = @transform_3, window_bounds = array<i64: 1, 64, 192>}]} {
    %c0 = arith.constant 0 : index
    %c0_0 = arith.constant 0 : index
    %c0_1 = arith.constant 0 : index
    %0 = vector.load %arg2[%c0, %c0_0, %c0_1] : memref<1x64x192xf32, #tpu.memory_space<vmem>>, vector<1x64x192xf32>
    %c0_2 = arith.constant 0 : index
    %c0_3 = arith.constant 0 : index
    %c0_4 = arith.constant 0 : index
    %1 = vector.load %arg3[%c0_2, %c0_3, %c0_4] : memref<1x1x192xf32, #tpu.memory_space<vmem>>, vector<1x1x192xf32>
    %2 = vector.broadcast %1 : vector<1x1x192xf32> to vector<1x64x192xf32>
    %3 = arith.subf %0, %2 : vector<1x64x192xf32>
    %c0_5 = arith.constant 0 : index
    %c0_6 = arith.constant 0 : index
    %c0_7 = arith.constant 0 : index
    %4 = vector.load %arg4[%c0_5, %c0_6, %c0_7] : memref<1x1x192xf32, #tpu.memory_space<vmem>>, vector<1x1x192xf32>
    %5 = vector.broadcast %4 : vector<1x1x192xf32> to vector<1x64x192xf32>
    %6 = arith.mulf %3, %5 : vector<1x64x192xf32>
    %7 = arith.truncf %6 : vector<1x64x192xf32> to vector<1x64x192xbf16>
    %c0_8 = arith.constant 0 : index
    %c0_9 = arith.constant 0 : index
    %c0_10 = arith.constant 0 : index
    %8 = vector.load %arg5[%c0_8, %c0_9, %c0_10] : memref<1x64x192xbf16, #tpu.memory_space<vmem>>, vector<1x64x192xbf16>
    tpu.vector_store %arg5[%c0_8, %c0_9, %c0_10], %7 {strides = array<i32>} : memref<1x64x192xbf16, #tpu.memory_space<vmem>>, vector<1x64x192xbf16>,
    return
  }
  func.func @transform_0(%arg0: i32, %arg1: i32) -> (i32, i32, i32) {
    %c0_i32 = arith.constant 0 : i32
    %c0_i32_0 = arith.constant 0 : i32
    return %arg0, %arg1, %c0_i32 : i32, i32, i32
  }
  func.func @transform_1(%arg0: i32, %arg1: i32) -> (i32, i32, i32) {
    %c0_i32 = arith.constant 0 : i32
    %c0_i32_0 = arith.constant 0 : i32
    %c0_i32_1 = arith.constant 0 : i32
    %c0_i32_2 = arith.constant 0 : i32
    return %c0_i32, %c0_i32_0, %c0_i32_1 : i32, i32, i32
  }
  func.func @transform_2(%arg0: i32, %arg1: i32) -> (i32, i32, i32) {
    %c0_i32 = arith.constant 0 : i32
    %c0_i32_0 = arith.constant 0 : i32
    %c0_i32_1 = arith.constant 0 : i32
    %c0_i32_2 = arith.constant 0 : i32
    return %c0_i32, %c0_i32_0, %c0_i32_1 : i32, i32, i32
  }
  func.func @transform_3(%arg0: i32, %arg1: i32) -> (i32, i32, i32) {
    %c0_i32 = arith.constant 0 : i32
    %c0_i32_0 = arith.constant 0 : i32
    return %arg0, %arg1, %c0_i32 : i32, i32, i32
  }
}

</mosaic_0001>

<bundles_post_ra>
// kernel: tpu_custom_call.1
= control target key start
LH: loop header
LB: loop body
LE: loop exit
PB: predicated region body
PF: predicated region fallthrough
CT: control target
= control target key end

     0   :  { %s975_s0 = inlined_call_operand.hbm [shape: f32[4,64,192], index: 0, kind: input, shape index: {}]   ;;  %s976_s1 = inlined_call_operand.hbm [shape: f32[1,1,192], index: 1, kind: input, shape index: {}]   ;;  %s977_s2 = inlined_call_operand.hbm [shape: f32[1,1,192], index: 2, kind: input, shape index: {}]   ;;  %s978_s3 = inlined_call_operand.hbm [shape: bf16[4,64,192], index: 3, kind: output, shape index: {}]  }
   0x1   :  { %979 = sst [smem:[#allocation12_spill]] %s976_s1 }
   0x2   :  { %8 = vsyncpa [#allocation3], 0 }
   0x3   :  { %10 = vsyncpa [#allocation3 + $0x1], 0 }
   0x4   :  { %11 = vsyncpa [#allocation6], 0 }
   0x5   :  { %12 = vsyncpa [#allocation4], 0 }
   0x6   :  { %14 = vsyncpa [#allocation4 + $0x1], 0  ;;  %s757_s12 = smov 0   ;;  %s759_s13 = smov 0  }
   0x7   :  { %s761_s14 = smov 0   ;;  %s763_s15 = smov 0  }
   0x8   :  { %s765_s16 = smov 0   ;;  %s767_s17 = smov 0  }
   0x9 LB: > { %s445_s18 = sadd.s32 4294967295, %s729_s17   ;;  %s446_s19 = sadd.s32 4294967294, %s729_s17   ;;  %s729_s17 = sphi %s767_s17, %s20_s17   ;;  %s725_s16 = sphi %s765_s16, %s994_s16   ;;  %s721_s15 = sphi %s763_s15, %s993_s15   ;;  %s717_s14 = sphi %s761_s14, %s992_s14   ;;  %s713_s13 = sphi %s759_s13, %s991_s13   ;;  %s709_s12 = sphi %s757_s12, %s990_s12  }
   0xa   : > { %s41_s20 = sadd.s32 1, %s717_s14  ;;  %p48_p0 = scmp.ne.s32.totalorder %s717_s14, %s713_s13 }
   0xb   : > { %p49_p1 = scmp.eq.s32.totalorder %s729_s17, 0  ;;  %p54_p2 = scmp.ne.s32.totalorder %s713_s13, %s709_s12 }
   0xc   : > { %p795_p3 = scmp.eq.s32.totalorder %s445_s18, 0  ;;  %p122_p4 = scmp.eq.s32.totalorder %s445_s18, 3 }
   0xd   : > { %p799_p5 = por %p49_p1, %p48_p0  ;;  %p128_p6 = scmp.eq.s32.totalorder %s446_s19, 3 }
   0xe   : > { %p805_p7 = por %p795_p3, %p54_p2  ;;  %p809_p8 = por %p122_p4, %p48_p0 }
   0xf   : > { %p813_p9 = por %p128_p6, %p54_p2  ;;  %p447_p10 = scmp.ge.s32.totalorder %s729_s17, 1 }
  0x10   : > { %p135_p11 = scmp.lt.s32.totalorder %s729_s17, 5  ;;  %s985_s1 = sld [smem:[#allocation12_spill]] }
  0x11   : > { %s731_s30 = smov [#allocation5]   ;;  %p495_p0 = scmp.lt.s32.totalorder %s729_s17, 4 }
  0x12   : > { %p822_p12 = pnand %p447_p10, %p135_p11  ;;  %s149_s4 = sshll.u32 %s731_s30, 4  ;;  %s150_s4 = int_to_ptr.vmem [resolvable:$true] %s149_s4 }
  0x13   : > { %s159_s7 = sshll.u32 %s977_s2, 4  ;;  %p836_p2 = pnand %p495_p0, %p799_p5  ;;  %s160_s7 = int_to_ptr.hbm [resolvable:$true] %s159_s7 }
  0x14   : > { %p478_p13 = pneg %p822_p12  ;;  %s732_s9 = smov [#allocation7]  }
  0x15   : > { %s161_s10 = sshll.u32 %s732_s9, 4  ;;  %s172_s11 = sand.u32 1, %s717_s14   ;;  %s162_s10 = int_to_ptr.vmem [resolvable:$true] %s161_s10 }
  0x16   : > { %s147_s28 = sshll.u32 %s985_s1, 4  ;;  %p479_p1 = pnand %p478_p13, %p795_p3  ;;  %s148_s28 = int_to_ptr.hbm [resolvable:$true] %s147_s28 }
  0x17   : > { %s32_s18 = sadd.s32 1, %s725_s16  ;;  %s451_s19 = sshll.u32 %s172_s11, 7 }
  0x18   : > { %481 = dma.hbm_to_vmem [thread:$0]  (!%p479_p1), %s148_s28, 32, %s150_s4, [#allocation6]  }
  0x19   : > { %484 = dma.hbm_to_vmem [thread:$0]  (!%p479_p1), %s160_s7, 32, %s162_s10, [#allocation6]  }
  0x1a   : > { %p34_p4 = scmp.ge.s32.totalorder %s32_s18, 4  ;;  %s464_s26 = sshll.u32 %s725_s16, 7 }
  0x1b   : > { %s176_s27 = scalar_lea.vmem [#allocation2], %s451_s19  ;;  %s184_s6 = scalar_lea.hbm %s975_s0, %s464_s26 }
  0x1c   : > { %s187_s22 = sshll.u32 %s176_s27, 4  ;;  %s996_s18 = smov (%p34_p4, %s32_s18), 0  ;;  %s188_s22 = int_to_ptr.vmem [resolvable:$true] %s187_s22 }
  0x1d   : > { %s36_s28 = ssub.s32 %s725_s16, %s996_s18  ;;  %s185_s4 = sshll.u32 %s184_s6, 4  ;;  %s186_s4 = int_to_ptr.hbm [resolvable:$true] %s185_s4 }
  0x1e   : > { %p39_p5 = scmp.eq.s32.totalorder %s36_s28, 0  ;;  %s173_s9 = scalar_lea.sflag [#allocation3], %s172_s11 }
  0x1f   : > { %s733_s10 = smov 256   ;;  %s734_s1 = smov 16  }
  0x20   : > { %s853_s7 = scalar_select %p39_p5, %s717_s14, %s41_s20  }
  0x21   : > { %488 = dma.hbm_to_vmem [thread:$0]  (!%p836_p2), %s186_s4, 2048, %s188_s22, %s173_s9, %s733_s10, %s733_s10, %s734_s1  }
  0x22   : > { %199 = sbr.rel (%p822_p12) target bundleno = 63 (0x3f), region = 32  ;;  %s860_s19 = sand.u32 (!%p822_p12), 1, %s713_s13  }
  0x23   : > { %s455_s26 = sshll.u32 (!%p822_p12), %s860_s19, 7  ;;  %s202_s27 = scalar_lea.sflag (!%p822_p12), [#allocation3], %s860_s19 }
  0x24   : > { %s864_s30 = scalar_lea.vmem (!%p822_p12), [#allocation2], %s455_s26 }
  0x27   : > { %696 = dma.done.wait (%p805_p7), %s202_s27, 2048  }
  0x28   : > { %698 = vsyncadd (%p805_p7), %s202_s27, 4294965248 }
  0x29   : > { %700 = dma.done.wait (%p795_p3), [#allocation6], 64  }
  0x2a   : > { %702 = vsyncadd (%p795_p3), [#allocation6], 4294967232  ;;  %v241_v0 = vld [vmem:[%s864_s30] sm:$0xff]  ;;  %v242_v1 = vld [vmem:[%s864_s30 + $0x8] sm:$0xff]  ;;  %vm309_vm0 = vcmask 1043456   ;;  %vm310_vm1 = vcmask 523268  }
  0x2b   : > { %v257_v2 = vld [vmem:[#allocation5] sm:$0x3]  ;;  %v279_v5 = vld [vmem:[#allocation7] sm:$0x3]  ;;  %v243_v6 = vld [vmem:[%s864_s30 + $0x10] sm:$0xff]  ;;  %s458_s1 = sshll.u32 %s860_s19, 6 }
  0x2c   : > { %v876_v3 = vperm.slane %v257_v2, 0  ;;  %v878_v4 = vperm.slane %v257_v2, 1  ;;  %v244_v7 = vld [vmem:[%s864_s30 + $0x18] sm:$0xff]  ;;  %v281_v8 = vperm.slane %v279_v5, 0  ;;  %v282_v9 = vperm.slane %v279_v5, 1  ;;  %v245_v10 = vld [vmem:[%s864_s30 + $0x20] sm:$0xff]  ;;  %vm902_vm2 = vmor %vm310_vm1, %vm309_vm0 }
  0x2d   : > { %v246_v11 = vld [vmem:[%s864_s30 + $0x28] sm:$0xff]  ;;  %v247_v12 = vld [vmem:[%s864_s30 + $0x30] sm:$0xff]  ;;  %v248_v17 = vld [vmem:[%s864_s30 + $0x38] sm:$0xff]  ;;  %s465_s20 = sshll.u32 %s721_s15, 6  ;;  %s238_s29 = scalar_lea.vmem [#allocation8], %s458_s1 }
  0x2e   : > { %v263_v13 = vsub.f32 %v241_v0, %v876_v3  ;;  %v264_v14 = vsub.f32 %v242_v1, %v878_v4  ;;  %v265_v15 = vsub.f32 %v243_v6, %v876_v3  ;;  %v266_v16 = vsub.f32 %v244_v7, %v878_v4  ;;  %v249_v22 = vld [vmem:[%s864_s30 + $0x40] sm:$0xff]  ;;  %v250_v23 = vld [vmem:[%s864_s30 + $0x48] sm:$0xff]  ;;  %v251_v28 = vld [vmem:[%s864_s30 + $0x50] sm:$0xff]  ;;  %s915_s23 = scalar_lea.hbm %s978_s3, %s465_s20  ;;  %s336_s8 = sshll.u32 %s238_s29, 4  ;;  %s337_s8 = int_to_ptr.vmem [resolvable:$true] %s336_s8 }
  0x2f   : > { %v267_v18 = vsub.f32 %v245_v10, %v876_v3  ;;  %v268_v19 = vsub.f32 %v246_v11, %v878_v4  ;;  %v269_v20 = vsub.f32 %v247_v12, %v876_v3  ;;  %v270_v21 = vsub.f32 %v248_v17, %v878_v4  ;;  %v252_v29 = vld [vmem:[%s864_s30 + $0x58] sm:$0xff]  ;;  %v253_v35 = vld [vmem:[%s864_s30 + $0x60] sm:$0xff]  ;;  %v254_v36 = vld [vmem:[%s864_s30 + $0x68] sm:$0xff]  ;;  %s338_s11 = sshll.u32 %s915_s23, 4  ;;  %s321_s22 = scalar_lea.sflag [#allocation4], %s860_s19  ;;  %s339_s11 = int_to_ptr.hbm [resolvable:$true] %s338_s11 }
  0x30   : > { %v285_v24 = vmul.f32 %v281_v8, %v263_v13  ;;  %v286_v25 = vmul.f32 %v282_v9, %v264_v14  ;;  %v287_v26 = vmul.f32 %v281_v8, %v265_v15  ;;  %v288_v27 = vmul.f32 %v282_v9, %v266_v16  ;;  %v255_v41 = vld [vmem:[%s864_s30 + $0x70] sm:$0xff]  ;;  %v256_v42 = vld [vmem:[%s864_s30 + $0x78] sm:$0xff]  ;;  %s657_s5 = sshra.s32 %s339_s11, 4  ;;  %s663_s9 = scalar_lea.hbm %s978_s3, 256  ;;  %s658_s5 = int_to_ptr.hbm [resolvable:$true] %s657_s5 }
  0x31   : > { %v289_v31 = vmul.f32 %v281_v8, %v267_v18  ;;  %v290_v32 = vmul.f32 %v282_v9, %v268_v19  ;;  %v291_v33 = vmul.f32 %v281_v8, %v269_v20  ;;  %v292_v34 = vmul.f32 %v282_v9, %v270_v21  ;;  %s659_s6 = scalar_lea.hbm %s658_s5, 64  ;;  %p664_p10 = scmp.lt.s32.totalorder %s658_s5, %s978_s3 }
  0x32   : > { %v301_v37 = vpack.c.bf16 %v286_v25, %v285_v24  ;;  %v302_v38 = vpack.c.bf16 %v288_v27, %v287_v26  ;;  %v271_v39 = vsub.f32 %v249_v22, %v876_v3  ;;  %v272_v40 = vsub.f32 %v250_v23, %v878_v4  ;;  %p660_p3 = scmp.ne.s32.totalorder %s658_s5, %s659_s6  ;;  %p665_p11 = scmp.lt.s32.totalorder %s663_s9, %s659_s6 }
  0x33   : > { %v303_v43 = vpack.c.bf16 %v290_v32, %v289_v31  ;;  %v304_v44 = vpack.c.bf16 %v292_v34, %v291_v33  ;;  %v273_v45 = vsub.f32 %v251_v28, %v876_v3  ;;  %v274_v46 = vsub.f32 %v252_v29, %v878_v4 }
  0x34   : > { %312 = vst.msk [vmem:[%s238_s29] sm:$0xff] %vm902_vm2, %v301_v37  ;;  %v293_v47 = vmul.f32 %v281_v8, %v271_v39  ;;  %v294_v48 = vmul.f32 %v282_v9, %v272_v40  ;;  %v275_v49 = vsub.f32 %v253_v35, %v876_v3  ;;  %v276_v50 = vsub.f32 %v254_v36, %v878_v4  ;;  %p661_p6 = pnand %p660_p3, %p809_p8  ;;  %p666_p12 = por %p665_p11, %p664_p10 }
  0x35   : > { %313 = vst.msk [vmem:[%s238_s29 + $0x8] sm:$0xff] %vm902_vm2, %v302_v38  ;;  %v295_v51 = vmul.f32 %v281_v8, %v273_v45  ;;  %v296_v52 = vmul.f32 %v282_v9, %v274_v46  ;;  %v277_v53 = vsub.f32 %v255_v41, %v876_v3  ;;  %v278_v54 = vsub.f32 %v256_v42, %v878_v4 }
  0x36   : > { %314 = vst.msk [vmem:[%s238_s29 + $0x10] sm:$0xff] %vm902_vm2, %v303_v43  ;;  %v305_v55 = vpack.c.bf16 %v294_v48, %v293_v47  ;;  %v297_v56 = vmul.f32 %v281_v8, %v275_v49  ;;  %v298_v57 = vmul.f32 %v282_v9, %v276_v50  ;;  %p662_p7 = pneg %p661_p6 }
  0x37   : > { %315 = vst.msk [vmem:[%s238_s29 + $0x18] sm:$0xff] %vm902_vm2, %v304_v44  ;;  %v306_v58 = vpack.c.bf16 %v296_v52, %v295_v51  ;;  %v299_v59 = vmul.f32 %v281_v8, %v277_v53  ;;  %v300_v60 = vmul.f32 %v282_v9, %v278_v54 }
  0x38   : > { %316 = vst.msk [vmem:[%s238_s29 + $0x20] sm:$0xff] %vm902_vm2, %v305_v55  ;;  %v307_v61 = vpack.c.bf16 %v298_v57, %v297_v56  ;;  %p667_p13 = pnand %p666_p12, %p662_p7 }
  0x39   : > { %317 = vst.msk [vmem:[%s238_s29 + $0x28] sm:$0xff] %vm902_vm2, %v306_v58  ;;  %v308_v62 = vpack.c.bf16 %v300_v60, %v299_v59 }
  0x3a   : > { %318 = vst.msk [vmem:[%s238_s29 + $0x30] sm:$0xff] %vm902_vm2, %v307_v61 }
  0x3b   : > { %319 = vst.msk [vmem:[%s238_s29 + $0x38] sm:$0xff] %vm902_vm2, %v308_v62 }
  0x3c   : > { %670 = shalt.err (!%p667_p13)
}
  0x3d   : > { %s735_s19 = smov 128   ;;  %s736_s27 = smov 8  }
  0x3e   : > { %476 = dma.vmem_to_hbm [thread:$0]  (%p809_p8), %s337_s8, 1024, %s339_s11, %s321_s22, %s735_s19, %s735_s19, %s736_s27  }
  0x3f PF: > { %p498_p0 = scmp.ge.s32.totalorder %s729_s17, 2  ;;  %s353_s30 = sand.u32 1, %s709_s12  }
  0x40   : > { %s354_s1 = scalar_lea.sflag [#allocation4], %s353_s30 }
  0x41   : > { %p490_p1 = pnand %p498_p0, %p813_p9 }
  0x43   : > { %p491_p2 = pneg %p490_p1 }
  0x45   : > { %704 = dma.done.wait (%p491_p2), %s354_s1, 1024  }
  0x46   : > { %706 = vsyncadd (%p491_p2), %s354_s1, 4294966272  ;;  %s20_s17 = sadd.s32 1, %s729_s17   ;;  %s990_s12 = smov %s713_s13 }
  0x47   : > { %p17_p4 = scmp.ge.s32.totalorder %s20_s17, 6   ;;  %s991_s13 = smov %s717_s14 }
  0x48   : > { %s992_s14 = smov %s853_s7  ;;  %s993_s15 = smov %s725_s16 }
  0x49   : > { %s994_s16 = smov %s996_s18  ;;  %19 = sbr.rel (!%p17_p4) target bundleno = 9 (0x9), region = 85 }
  0x4e   :  { %360 = vsyncpa [#allocation3], 1 }
  0x4f   :  { %362 = vsyncpa [#allocation3 + $0x1], 1 }
  0x50   :  { %363 = vsyncpa [#allocation6], 1 }
  0x51   :  { %364 = vsyncpa [#allocation4], 1 }
  0x52   :  { %366 = vsyncpa [#allocation4 + $0x1], 1 }

</bundles_post_ra>
